<compile_context>
chip_gen: v7x
topology: tpu7x:2x2x1
jax: 0.10.0
libtpu: 0.0.40
codegen_flags: <defaults>
</compile_context>

<pallas_src>
import math
from functools import partial

import jax
import jax.numpy as jnp
from jax.experimental import pallas as pl
from jax.experimental.pallas import tpu as pltpu

EPS = 1e-6
LANE = 128
SUBLANE = 8


def _round_up(n, m):
    return ((n + m - 1) // m) * m


def _pad_axis(a, target, axis):
    pad = target - a.shape[axis]
    if pad <= 0:
        return a
    widths = [(0, 0)] * a.ndim
    widths[axis] = (0, pad)
    return jnp.pad(a, widths)


# ----------------------------- Pallas kernel --------------------------------
def _mlp_kernel(*refs, n_layers: int, real_dims: tuple):
    """Fused MLP forward over one batch tile.

    refs layout:
      refs[0]  : x tile   (TB, D0_pad)          compute dtype (bf16)
      per layer i in [0, n_layers):
        W_i (Din_pad, Dout_pad)                  compute dtype (pre-transposed: in x out)
        b_i (1,       Dout_pad)                  f32
        g_i (1,       Dout_pad)  (i < n-1 only)  f32 RMSNorm weight
      refs[-1] : out tile (TB, Dlast_pad)        output dtype
    """
    x_ref = refs[0]
    out_ref = refs[-1]
    params = refs[1:-1]

    h = x_ref[...]                      # keep MXU operands in bf16
    idx = 0
    for i in range(n_layers):
        w = params[idx][...]
        b = params[idx + 1][...]
        idx += 2
        # Linear: h @ W + b  (MXU, f32 accumulation)
        acc = jnp.dot(h, w, preferred_element_type=jnp.float32)
        acc = acc + b                   # (1, D) implicit broadcast, f32
        if i < n_layers - 1:
            g = params[idx][...]
            idx += 1
            # SiLU in f32 (VPU + EUP)
            acc = acc * jax.nn.sigmoid(acc)
            # RMSNorm in f32. Padded columns are exactly zero, so the sum of
            # squares is correct; rescale the mean for the real feature width.
            d_pad = acc.shape[-1]
            scale = float(d_pad) / float(real_dims[i + 1])
            ms = jnp.mean(acc * acc, axis=-1, keepdims=True) * scale
            acc = acc * jax.lax.rsqrt(ms + EPS)
            acc = acc * g
            h = acc.astype(h.dtype)     # back to bf16 for the next MXU pass
        else:
            out_ref[...] = acc.astype(out_ref.dtype)


# ------------------------------- wrapper -------------------------------------
def mlp_forward(x, weights, biases, norm_weights, *,
                batch_tile=256, compute_dtype=jnp.bfloat16):
    """weights[i]: (in_i, out_i) (already transposed from torch's (out, in)),
       biases[i]: (1, out_i), norm_weights[i]: (1, out_i) for i < n-1."""
    n_layers = len(weights)
    dims = [weights[0].shape[0]] + [w.shape[1] for w in weights]
    dims_pad = [_round_up(d, LANE) for d in dims]

    B = x.shape[0]
    out_dim = dims[-1]
    out_dtype = x.dtype

    TB = min(batch_tile, _round_up(B, SUBLANE))
    B_pad = _round_up(B, TB)

    x_p = _pad_axis(_pad_axis(x, dims_pad[0], 1), B_pad, 0).astype(compute_dtype)

    args = [x_p]
    in_specs = [pl.BlockSpec((TB, dims_pad[0]), lambda i: (i, 0))]
    for li in range(n_layers):
        w = _pad_axis(_pad_axis(weights[li], dims_pad[li], 0), dims_pad[li + 1], 1)
        w = w.astype(compute_dtype)
        b = _pad_axis(biases[li], dims_pad[li + 1], 1).astype(jnp.float32)
        args += [w, b]
        # Constant index maps -> weights/biases stay VMEM-resident across grid steps.
        in_specs += [pl.BlockSpec(w.shape, lambda i: (0, 0)),
                     pl.BlockSpec(b.shape, lambda i: (0, 0))]
        if li < n_layers - 1:
            g = _pad_axis(norm_weights[li], dims_pad[li + 1], 1).astype(jnp.float32)
            args.append(g)
            in_specs.append(pl.BlockSpec(g.shape, lambda i: (0, 0)))

    out_specs = pl.BlockSpec((TB, dims_pad[-1]), lambda i: (i, 0))
    grid = (B_pad // TB,)

    # --- cost / VMEM hints ----------------------------------------------------
    flops = 2 * B_pad * sum(dims_pad[i] * dims_pad[i + 1] for i in range(n_layers))
    transcendentals = B_pad * sum(dims_pad[1:-1])          # one exp per SiLU elem
    bytes_accessed = int(
        x_p.size * x_p.dtype.itemsize
        + sum(a.size * a.dtype.itemsize for a in args[1:])
        + B_pad * dims_pad[-1] * jnp.dtype(out_dtype).itemsize)

    param_bytes = sum(a.size * a.dtype.itemsize for a in args[1:])
    tile_bytes = (2 * TB * dims_pad[0] * jnp.dtype(compute_dtype).itemsize   # x dbl-buf
                  + 2 * TB * dims_pad[-1] * jnp.dtype(out_dtype).itemsize    # out dbl-buf
                  + 4 * TB * max(dims_pad) * 4)                              # live f32 acts
    vmem_limit = int(min(max(2 * (param_bytes + tile_bytes), 8 << 20), 64 << 20))

    out = pl.pallas_call(
        partial(_mlp_kernel, n_layers=n_layers, real_dims=tuple(dims)),
        out_shape=jax.ShapeDtypeStruct((B_pad, dims_pad[-1]), out_dtype),
        grid_spec=pltpu.PrefetchScalarGridSpec(
            num_scalar_prefetch=0,
            grid=grid,
            in_specs=in_specs,
            out_specs=out_specs,
        ),
        compiler_params=pltpu.CompilerParams(
            dimension_semantics=("parallel",),
            vmem_limit_bytes=vmem_limit,
        ),
        cost_estimate=pl.CostEstimate(
            flops=flops,
            transcendentals=transcendentals,
            bytes_accessed=bytes_accessed),
    )(*args)

    return out[:B, :out_dim]


# --------------------------- parameter init (glue) ---------------------------
def orthogonal_init(key, shape, gain):
    """Deterministic orthogonal init (mirrors nn.init.orthogonal_ semantics)."""
    rows, cols = shape
    n = max(rows, cols)
    a = jax.random.normal(key, (n, min(rows, cols)), dtype=jnp.float32)
    q, r = jnp.linalg.qr(a)
    q = q * jnp.sign(jnp.diagonal(r))
    q = q[:rows, :cols] if rows >= cols else q.T[:rows, :cols]
    return gain * q


def build_mlp_params(key, dim_list, last_std=None):
    """Returns (weights_T, biases, norm_weights) matching the torch MLP module.

    weights_T[i] has shape (in, out): torch weight (out, in) transposed.
    """
    n_layers = len(dim_list) - 1
    weights_T, biases, norm_weights = [], [], []
    for i in range(n_layers):
        key, sub = jax.random.split(key)
        std = last_std if (last_std is not None and i == n_layers - 1) else math.sqrt(2.0)
        w = orthogonal_init(sub, (dim_list[i + 1], dim_list[i]), std)   # (out, in)
        weights_T.append(jnp.asarray(w.T, dtype=jnp.float32))           # (in, out)
        biases.append(jnp.zeros((1, dim_list[i + 1]), dtype=jnp.float32))
        if i < n_layers - 1:
            norm_weights.append(jnp.ones((1, dim_list[i + 1]), dtype=jnp.float32))
    return weights_T, biases, norm_weights


# ------------------------------ pure-JAX reference ---------------------------
def mlp_reference(x, weights, biases, norm_weights, compute_dtype=jnp.bfloat16):
    """Mirrors the kernel numerics (bf16 operands, f32 accumulation / norm math)."""
    h = x.astype(compute_dtype)
    n_layers = len(weights)
    for i in range(n_layers):
        w = weights[i].astype(compute_dtype)
        acc = jnp.dot(h.astype(jnp.float32), w.astype(jnp.float32)) + biases[i]
        if i < n_layers - 1:
            acc = acc * jax.nn.sigmoid(acc)
            ms = jnp.mean(acc * acc, axis=-1, keepdims=True)
            acc = acc * jax.lax.rsqrt(ms + EPS) * norm_weights[i]
            h = acc.astype(compute_dtype)
        else:
            return acc.astype(x.dtype)


# ------------------------------------ main -----------------------------------
if __name__ == "__main__":
    key = jax.random.PRNGKey(0)
    dim_list = [32, 64, 64, 16]   # MLP(dim_list): (Linear+SiLU+RMSNorm) x2, final Linear
    batch = 8

    k_x, k_p = jax.random.split(key)
    x = jax.random.normal(k_x, (batch, dim_list[0]), dtype=jnp.float32)
    weights, biases, norm_weights = build_mlp_params(k_p, dim_list)

    out = mlp_forward(x, weights, biases, norm_weights)
    out = jax.block_until_ready(out)
    ref = mlp_reference(x, weights, biases, norm_weights)
    assert out.shape == (batch, dim_list[-1]), out.shape
    assert jnp.allclose(out, ref, atol=1e-2, rtol=1e-2), "mismatch vs reference"

    # Second check: ragged batch that exercises the grid / batch-padding path.
    x2 = jax.random.normal(jax.random.PRNGKey(1), (300, dim_list[0]), dtype=jnp.float32)
    out2 = jax.block_until_ready(mlp_forward(x2, weights, biases, norm_weights))
    ref2 = mlp_reference(x2, weights, biases, norm_weights)
    assert out2.shape == (300, dim_list[-1]), out2.shape
    assert jnp.allclose(out2, ref2, atol=1e-2, rtol=1e-2), "mismatch vs reference (grid)"

    print("KERNEL_OK")
</pallas_src>

<mosaic_0001>
module attributes {stable_mosaic.version = 11 : i64} {
  func.func @_mlp_kernel(%arg0: i32, %arg1: memref<8x128xbf16, #tpu.memory_space<vmem>>, %arg2: memref<128x128xbf16, #tpu.memory_space<vmem>>, %arg3: memref<1x128xf32, #tpu.memory_space<vmem>>, %arg4: memref<1x128xf32, #tpu.memory_space<vmem>>, %arg5: memref<128x128xbf16, #tpu.memory_space<vmem>>, %arg6: memref<1x128xf32, #tpu.memory_space<vmem>>, %arg7: memref<1x128xf32, #tpu.memory_space<vmem>>, %arg8: memref<128x128xbf16, #tpu.memory_space<vmem>>, %arg9: memref<1x128xf32, #tpu.memory_space<vmem>>, %arg10: memref<8x128xf32, #tpu.memory_space<vmem>>) attributes {dimension_semantics = [#tpu.dimension_semantics<parallel>], iteration_bounds = array<i64: 1>, scalar_prefetch = 0 : i64, scratch_operands = 0 : i64, tpu.core_type = #tpu.core_type<tc>, window_params = [{transform_indices = @transform_0, window_bounds = array<i64: 8, 128>}, {pipeline_mode = #tpu.pipeline_mode<synchronous>, transform_indices = @transform_1, window_bounds = array<i64: 128, 128>}, {pipeline_mode = #tpu.pipeline_mode<synchronous>, transform_indices = @transform_2, window_bounds = array<i64: 1, 128>}, {pipeline_mode = #tpu.pipeline_mode<synchronous>, transform_indices = @transform_3, window_bounds = array<i64: 1, 128>}, {pipeline_mode = #tpu.pipeline_mode<synchronous>, transform_indices = @transform_4, window_bounds = array<i64: 128, 128>}, {pipeline_mode = #tpu.pipeline_mode<synchronous>, transform_indices = @transform_5, window_bounds = array<i64: 1, 128>}, {pipeline_mode = #tpu.pipeline_mode<synchronous>, transform_indices = @transform_6, window_bounds = array<i64: 1, 128>}, {pipeline_mode = #tpu.pipeline_mode<synchronous>, transform_indices = @transform_7, window_bounds = array<i64: 128, 128>}, {pipeline_mode = #tpu.pipeline_mode<synchronous>, transform_indices = @transform_8, window_bounds = array<i64: 1, 128>}, {transform_indices = @transform_9, window_bounds = array<i64: 8, 128>}]} {
    %c0 = arith.constant 0 : index
    %c0_0 = arith.constant 0 : index
    %0 = vector.load %arg1[%c0, %c0_0] : memref<8x128xbf16, #tpu.memory_space<vmem>>, vector<8x128xbf16>
    %c0_1 = arith.constant 0 : index
    %c0_2 = arith.constant 0 : index
    %1 = vector.load %arg2[%c0_1, %c0_2] : memref<128x128xbf16, #tpu.memory_space<vmem>>, vector<128x128xbf16>
    %c0_3 = arith.constant 0 : index
    %c0_4 = arith.constant 0 : index
    %2 = vector.load %arg3[%c0_3, %c0_4] : memref<1x128xf32, #tpu.memory_space<vmem>>, vector<1x128xf32>
    %cst = arith.constant dense<0.000000e+00> : vector<8x128xf32>
    %3 = tpu.matmul %0, %1, %cst {dimension_numbers = #tpu.dot_dimension_numbers<[1], [0], [0], [1], [0, 0, 1, 1], [], []>} : vector<8x128xbf16>, vector<128x128xbf16>, vector<8x128xf32> -> vector<8x128xf32>
    %4 = vector.broadcast %2 : vector<1x128xf32> to vector<8x128xf32>
    %5 = arith.addf %3, %4 : vector<8x128xf32>
    %c0_5 = arith.constant 0 : index
    %c0_6 = arith.constant 0 : index
    %6 = vector.load %arg4[%c0_5, %c0_6] : memref<1x128xf32, #tpu.memory_space<vmem>>, vector<1x128xf32>
    %7 = arith.negf %5 : vector<8x128xf32>
    %8 = math.exp %7 : vector<8x128xf32>
    %cst_7 = arith.constant 1.000000e+00 : f32
    %9 = vector.broadcast %cst_7 : f32 to vector<8x128xf32>
    %10 = arith.addf %9, %8 : vector<8x128xf32>
    %11 = arith.divf %9, %10 : vector<8x128xf32>
    %12 = arith.mulf %5, %11 : vector<8x128xf32>
    %13 = arith.mulf %12, %12 : vector<8x128xf32>
    %cst_8 = arith.constant dense<0.000000e+00> : vector<8xf32>
    %14 = vector.multi_reduction <add>, %13, %cst_8 [1] : vector<8x128xf32> to vector<8xf32>
    %15 = vector.shape_cast %14 : vector<8xf32> to vector<8x1xf32>
    %cst_9 = arith.constant 1.280000e+02 : f32
    %16 = vector.broadcast %cst_9 : f32 to vector<8x1xf32>
    %17 = arith.divf %15, %16 : vector<8x1xf32>
    %cst_10 = arith.constant 2.000000e+00 : f32
    %18 = vector.broadcast %cst_10 : f32 to vector<8x1xf32>
    %19 = arith.mulf %17, %18 : vector<8x1xf32>
    %cst_11 = arith.constant 9.99999997E-7 : f32
    %20 = vector.broadcast %cst_11 : f32 to vector<8x1xf32>
    %21 = arith.addf %19, %20 : vector<8x1xf32>
    %22 = math.rsqrt %21 : vector<8x1xf32>
    %23 = vector.broadcast %22 : vector<8x1xf32> to vector<8x128xf32>
    %24 = arith.mulf %12, %23 : vector<8x128xf32>
    %25 = vector.broadcast %6 : vector<1x128xf32> to vector<8x128xf32>
    %26 = arith.mulf %24, %25 : vector<8x128xf32>
    %27 = arith.truncf %26 : vector<8x128xf32> to vector<8x128xbf16>
    %c0_12 = arith.constant 0 : index
    %c0_13 = arith.constant 0 : index
    %28 = vector.load %arg5[%c0_12, %c0_13] : memref<128x128xbf16, #tpu.memory_space<vmem>>, vector<128x128xbf16>
    %c0_14 = arith.constant 0 : index
    %c0_15 = arith.constant 0 : index
    %29 = vector.load %arg6[%c0_14, %c0_15] : memref<1x128xf32, #tpu.memory_space<vmem>>, vector<1x128xf32>
    %cst_16 = arith.constant dense<0.000000e+00> : vector<8x128xf32>
    %30 = tpu.matmul %27, %28, %cst_16 {dimension_numbers = #tpu.dot_dimension_numbers<[1], [0], [0], [1], [0, 0, 1, 1], [], []>} : vector<8x128xbf16>, vector<128x128xbf16>, vector<8x128xf32> -> vector<8x128xf32>
    %31 = vector.broadcast %29 : vector<1x128xf32> to vector<8x128xf32>
    %32 = arith.addf %30, %31 : vector<8x128xf32>
    %c0_17 = arith.constant 0 : index
    %c0_18 = arith.constant 0 : index
    %33 = vector.load %arg7[%c0_17, %c0_18] : memref<1x128xf32, #tpu.memory_space<vmem>>, vector<1x128xf32>
    %34 = arith.negf %32 : vector<8x128xf32>
    %35 = math.exp %34 : vector<8x128xf32>
    %cst_19 = arith.constant 1.000000e+00 : f32
    %36 = vector.broadcast %cst_19 : f32 to vector<8x128xf32>
    %37 = arith.addf %36, %35 : vector<8x128xf32>
    %38 = arith.divf %36, %37 : vector<8x128xf32>
    %39 = arith.mulf %32, %38 : vector<8x128xf32>
    %40 = arith.mulf %39, %39 : vector<8x128xf32>
    %cst_20 = arith.constant dense<0.000000e+00> : vector<8xf32>
    %41 = vector.multi_reduction <add>, %40, %cst_20 [1] : vector<8x128xf32> to vector<8xf32>
    %42 = vector.shape_cast %41 : vector<8xf32> to vector<8x1xf32>
    %cst_21 = arith.constant 1.280000e+02 : f32
    %43 = vector.broadcast %cst_21 : f32 to vector<8x1xf32>
    %44 = arith.divf %42, %43 : vector<8x1xf32>
    %cst_22 = arith.constant 2.000000e+00 : f32
    %45 = vector.broadcast %cst_22 : f32 to vector<8x1xf32>
    %46 = arith.mulf %44, %45 : vector<8x1xf32>
    %cst_23 = arith.constant 9.99999997E-7 : f32
    %47 = vector.broadcast %cst_23 : f32 to vector<8x1xf32>
    %48 = arith.addf %46, %47 : vector<8x1xf32>
    %49 = math.rsqrt %48 : vector<8x1xf32>
    %50 = vector.broadcast %49 : vector<8x1xf32> to vector<8x128xf32>
    %51 = arith.mulf %39, %50 : vector<8x128xf32>
    %52 = vector.broadcast %33 : vector<1x128xf32> to vector<8x128xf32>
    %53 = arith.mulf %51, %52 : vector<8x128xf32>
    %54 = arith.truncf %53 : vector<8x128xf32> to vector<8x128xbf16>
    %c0_24 = arith.constant 0 : index
    %c0_25 = arith.constant 0 : index
    %55 = vector.load %arg8[%c0_24, %c0_25] : memref<128x128xbf16, #tpu.memory_space<vmem>>, vector<128x128xbf16>
    %c0_26 = arith.constant 0 : index
    %c0_27 = arith.constant 0 : index
    %56 = vector.load %arg9[%c0_26, %c0_27] : memref<1x128xf32, #tpu.memory_space<vmem>>, vector<1x128xf32>
    %cst_28 = arith.constant dense<0.000000e+00> : vector<8x128xf32>
    %57 = tpu.matmul %54, %55, %cst_28 {dimension_numbers = #tpu.dot_dimension_numbers<[1], [0], [0], [1], [0, 0, 1, 1], [], []>} : vector<8x128xbf16>, vector<128x128xbf16>, vector<8x128xf32> -> vector<8x128xf32>
    %58 = vector.broadcast %56 : vector<1x128xf32> to vector<8x128xf32>
    %59 = arith.addf %57, %58 : vector<8x128xf32>
    %c0_29 = arith.constant 0 : index
    %c0_30 = arith.constant 0 : index
    %60 = vector.load %arg10[%c0_29, %c0_30] : memref<8x128xf32, #tpu.memory_space<vmem>>, vector<8x128xf32>
    tpu.vector_store %arg10[%c0_29, %c0_30], %59 {strides = array<i32>} : memref<8x128xf32, #tpu.memory_space<vmem>>, vector<8x128xf32>,
    return
  }
  func.func @transform_0(%arg0: i32) -> (i32, i32) {
    %c0_i32 = arith.constant 0 : i32
    %c0_i32_0 = arith.constant 0 : i32
    return %arg0, %c0_i32 : i32, i32
  }
  func.func @transform_1(%arg0: i32) -> (i32, i32) {
    %c0_i32 = arith.constant 0 : i32
    %c0_i32_0 = arith.constant 0 : i32
    %c0_i32_1 = arith.constant 0 : i32
    return %c0_i32, %c0_i32_0 : i32, i32
  }
  func.func @transform_2(%arg0: i32) -> (i32, i32) {
    %c0_i32 = arith.constant 0 : i32
    %c0_i32_0 = arith.constant 0 : i32
    %c0_i32_1 = arith.constant 0 : i32
    return %c0_i32, %c0_i32_0 : i32, i32
  }
  func.func @transform_3(%arg0: i32) -> (i32, i32) {
    %c0_i32 = arith.constant 0 : i32
    %c0_i32_0 = arith.constant 0 : i32
    %c0_i32_1 = arith.constant 0 : i32
    return %c0_i32, %c0_i32_0 : i32, i32
  }
  func.func @transform_4(%arg0: i32) -> (i32, i32) {
    %c0_i32 = arith.constant 0 : i32
    %c0_i32_0 = arith.constant 0 : i32
    %c0_i32_1 = arith.constant 0 : i32
    return %c0_i32, %c0_i32_0 : i32, i32
  }
  func.func @transform_5(%arg0: i32) -> (i32, i32) {
    %c0_i32 = arith.constant 0 : i32
    %c0_i32_0 = arith.constant 0 : i32
    %c0_i32_1 = arith.constant 0 : i32
    return %c0_i32, %c0_i32_0 : i32, i32
  }
  func.func @transform_6(%arg0: i32) -> (i32, i32) {
    %c0_i32 = arith.constant 0 : i32
    %c0_i32_0 = arith.constant 0 : i32
    %c0_i32_1 = arith.constant 0 : i32
    return %c0_i32, %c0_i32_0 : i32, i32
  }
  func.func @transform_7(%arg0: i32) -> (i32, i32) {
    %c0_i32 = arith.constant 0 : i32
    %c0_i32_0 = arith.constant 0 : i32
    %c0_i32_1 = arith.constant 0 : i32
    return %c0_i32, %c0_i32_0 : i32, i32
  }
  func.func @transform_8(%arg0: i32) -> (i32, i32) {
    %c0_i32 = arith.constant 0 : i32
    %c0_i32_0 = arith.constant 0 : i32
    %c0_i32_1 = arith.constant 0 : i32
    return %c0_i32, %c0_i32_0 : i32, i32
  }
  func.func @transform_9(%arg0: i32) -> (i32, i32) {
    %c0_i32 = arith.constant 0 : i32
    %c0_i32_0 = arith.constant 0 : i32
    return %arg0, %c0_i32 : i32, i32
  }
}

</mosaic_0001>

<bundles_post_ra>
// kernel: tpu_custom_call.1
= control target key start
LH: loop header
LB: loop body
LE: loop exit
PB: predicated region body
PF: predicated region fallthrough
CT: control target
= control target key end

     0   :  { %14 = vsyncpa [#allocation3], 0  ;;  %s942_s0 = inlined_call_operand.hbm [shape: bf16[8,128], index: 0, kind: input, shape index: {}]   ;;  %s943_s1 = inlined_call_operand.hbm [shape: bf16[128,128], index: 1, kind: input, shape index: {}]   ;;  %s944_s2 = inlined_call_operand.vmem [shape: f32[1,128], index: 2, kind: input, shape index: {}]   ;;  %s945_s3 = inlined_call_operand.vmem [shape: f32[1,128], index: 3, kind: input, shape index: {}]   ;;  %s946_s4 = inlined_call_operand.hbm [shape: bf16[128,128], index: 4, kind: input, shape index: {}]   ;;  %s947_s5 = inlined_call_operand.vmem [shape: f32[1,128], index: 5, kind: input, shape index: {}]   ;;  %s948_s6 = inlined_call_operand.vmem [shape: f32[1,128], index: 6, kind: input, shape index: {}]   ;;  %s949_s7 = inlined_call_operand.hbm [shape: bf16[128,128], index: 7, kind: input, shape index: {}]   ;;  %s950_s8 = inlined_call_operand.vmem [shape: f32[1,128], index: 8, kind: input, shape index: {}]   ;;  %s951_s9 = inlined_call_operand.hbm [shape: f32[8,128], index: 9, kind: output, shape index: {}]  }
   0x1   :  { %15 = vsyncpa [#allocation6], 0 }
   0x2   :  { %16 = vsyncpa [#allocation9], 0 }
   0x3   :  { %17 = vsyncpa [#allocation4], 0  ;;  %s769_s30 = smov [#allocation5]   ;;  %s651_s13 = scalar_lea.hbm %s943_s1, 1024 }
   0x4   :  { %s33_s10 = sshll.u32 %s769_s30, 4  ;;  %p652_p0 = scmp.ne.s32.totalorder %s943_s1, %s651_s13  ;;  %s34_s10 = int_to_ptr.vmem [resolvable:$true] %s33_s10 }
   0x5   :  { %p655_p1 = scmp.lt.u32.totalorder %s651_s13, %s943_s1 }
   0x7   :  { %p657_p2 = pnand %p655_p1, %p652_p0 }
   0x9   :  { %660 = shalt.err (!%p657_p2)
}
   0xa   :  { %s661_s18 = scalar_lea.vmem %s34_s10, 1024  ;;  %p666_p4 = scmp.lt.s32.totalorder %s34_s10, %s34_s10 }
   0xb   :  { %p662_p3 = scmp.ne.s32.totalorder %s34_s10, %s661_s18  ;;  %p667_p5 = scmp.lt.s32.totalorder %s661_s18, %s661_s18 }
   0xd   :  { %p668_p6 = por %p667_p5, %p666_p4 }
   0xf   :  { %p669_p7 = pnand %p668_p6, %p662_p3 }
  0x11   :  { %672 = shalt.err (!%p669_p7)
}
  0x12   :  { %s770_s19 = smov 64   ;;  %s771_s20 = smov 4  }
  0x13   :  { %39 = dma.hbm_to_vmem [thread:$0]  %s943_s1, 1024, %s34_s10, [#allocation6], %s770_s19, %s770_s19, %s771_s20  }
  0x14   :  { %s772_s23 = smov [#allocation2]   ;;  %s773_s25 = smov [#allocation7]  }
  0x15   :  { %s24_s24 = sshll.u32 %s772_s23, 4  ;;  %s49_s26 = sshll.u32 %s773_s25, 4  ;;  %s25_s24 = int_to_ptr.vmem [resolvable:$true] %s24_s24  ;;  %s50_s26 = int_to_ptr.vmem [resolvable:$true] %s49_s26 }
  0x16   :  { %s673_s29 = scalar_lea.hbm %s942_s0, 64 }
  0x17   :  { %p674_p8 = scmp.ne.s32.totalorder %s942_s0, %s673_s29  ;;  %p677_p9 = scmp.lt.u32.totalorder %s673_s29, %s942_s0 }
  0x19   :  { %p679_p10 = pnand %p677_p9, %p674_p8 }
  0x1b   :  { %682 = shalt.err (!%p679_p10)
}
  0x1c   :  { %s683_s1 = scalar_lea.vmem %s25_s24, 64  ;;  %p688_p12 = scmp.lt.s32.totalorder %s25_s24, %s25_s24 }
  0x1d   :  { %p684_p11 = scmp.ne.s32.totalorder %s25_s24, %s683_s1  ;;  %p689_p13 = scmp.lt.s32.totalorder %s683_s1, %s683_s1 }
  0x1f   :  { %p690_p0 = por %p689_p13, %p688_p12 }
  0x21   :  { %p691_p1 = pnand %p690_p0, %p684_p11 }
  0x23   :  { %694 = shalt.err (!%p691_p1)
}
  0x24   :  { %27 = dma.hbm_to_vmem [thread:$0]  %s942_s0, 64, %s25_s24, [#allocation3]  }
  0x25   :  { %s695_s17 = scalar_lea.hbm %s946_s4, 1024 }
  0x26   :  { %p696_p2 = scmp.ne.s32.totalorder %s946_s4, %s695_s17  ;;  %p699_p3 = scmp.lt.u32.totalorder %s695_s17, %s946_s4 }
  0x28   :  { %p701_p4 = pnand %p699_p3, %p696_p2 }
  0x2a   :  { %704 = shalt.err (!%p701_p4)
}
  0x2b   :  { %s705_s25 = scalar_lea.vmem %s50_s26, 1024  ;;  %p710_p6 = scmp.lt.s32.totalorder %s50_s26, %s50_s26 }
  0x2c   :  { %p706_p5 = scmp.ne.s32.totalorder %s50_s26, %s705_s25  ;;  %p711_p7 = scmp.lt.s32.totalorder %s705_s25, %s705_s25 }
  0x2e   :  { %p712_p8 = por %p711_p7, %p710_p6 }
  0x30   :  { %p713_p9 = pnand %p712_p8, %p706_p5 }
  0x32   :  { %716 = shalt.err (!%p713_p9)
}
  0x33   :  { %55 = dma.hbm_to_vmem [thread:$0]  %s946_s4, 1024, %s50_s26, [#allocation6], %s770_s19, %s770_s19, %s771_s20  }
  0x34   :  { %s774_s27 = smov [#allocation8]   ;;  %s717_s11 = scalar_lea.hbm %s949_s7, 1024 }
  0x35   :  { %s65_s28 = sshll.u32 %s774_s27, 4  ;;  %p718_p10 = scmp.ne.s32.totalorder %s949_s7, %s717_s11  ;;  %s66_s28 = int_to_ptr.vmem [resolvable:$true] %s65_s28 }
  0x36   :  { %p721_p11 = scmp.lt.u32.totalorder %s717_s11, %s949_s7 }
  0x38   :  { %p723_p12 = pnand %p721_p11, %p718_p10 }
  0x3a   :  { %726 = shalt.err (!%p723_p12)
}
  0x3b   :  { %s727_s14 = scalar_lea.vmem %s66_s28, 1024  ;;  %p732_p0 = scmp.lt.s32.totalorder %s66_s28, %s66_s28 }
  0x3c   :  { %p728_p13 = scmp.ne.s32.totalorder %s66_s28, %s727_s14  ;;  %p733_p1 = scmp.lt.s32.totalorder %s727_s14, %s727_s14 }
  0x3e   :  { %p734_p2 = por %p733_p1, %p732_p0 }
  0x40   :  { %p735_p3 = pnand %p734_p2, %p728_p13 }
  0x42   :  { %738 = shalt.err (!%p735_p3)
}
  0x43   :  { %71 = dma.hbm_to_vmem [thread:$0]  %s949_s7, 1024, %s66_s28, [#allocation9], %s770_s19, %s770_s19, %s771_s20  }
  0x44   :  { %761 = dma.done.wait [#allocation3], 64  }
  0x45   :  { %762 = vsyncadd [#allocation3], 4294967232 }
  0x46   :  { %763 = dma.done.wait [#allocation6], 2048  }
  0x47   :  { %764 = vsyncadd [#allocation6], 4294965248 }
  0x48   :  { %765 = dma.done.wait [#allocation9], 1024  }
  0x49   :  { %766 = vsyncadd [#allocation9], 4294966272  ;;  %v775_v0 = vmov 0.0   ;;  %vm776_vm0 = vmmov 0   ;;  %v615_v1 = vld [vmem:[#allocation5] sm:$0xff]   ;;  %v616_v2 = vld [vmem:[#allocation5 + $0x8] sm:$0xff]  }
  0x4a   :  { %546 = vmatprep.subr.bf16.mxu0 %v775_v0  ;;  %562 = vmatprep.mubr.msk.bf16.mxu0 %vm776_vm0, %v775_v0  ;;  %v617_v3 = vld [vmem:[#allocation5 + $0x10] sm:$0xff]   ;;  %v618_v4 = vld [vmem:[#allocation5 + $0x18] sm:$0xff]   ;;  %v619_v5 = vld [vmem:[#allocation5 + $0x20] sm:$0xff]   ;;  %s777_s21 = smov [#allocation10]  }
  0x4b   :  { %566 = vmatprep.subr.bf16.mxu1 %v775_v0  ;;  %582 = vmatprep.mubr.msk.bf16.mxu1 %vm776_vm0, %v775_v0  ;;  %v620_v6 = vld [vmem:[#allocation5 + $0x28] sm:$0xff]   ;;  %v621_v7 = vld [vmem:[#allocation5 + $0x30] sm:$0xff]   ;;  %v622_v8 = vld [vmem:[#allocation5 + $0x38] sm:$0xff]   ;;  %s477_s22 = sshll.u32 %s777_s21, 4  ;;  %s478_s22 = int_to_ptr.vmem [resolvable:$true] %s477_s22 }
  0x4c   :  { %547 = vmatpush3.bf16.msra.mxu0 %v615_v1  ;;  %v87_v9 = vld [vmem:[#allocation2] sm:$0xf]  ;;  %v623_v10 = vld [vmem:[#allocation7] sm:$0xff]   ;;  %v624_v11 = vld [vmem:[#allocation7 + $0x8] sm:$0xff]   ;;  %s739_s23 = scalar_lea.vmem %s478_s22, 128  ;;  %p744_p5 = scmp.lt.s32.totalorder %s478_s22, %s478_s22 }
  0x4d   :  { %548 = vmatprep.subr.bf16.mxu0 %v775_v0  ;;  %567 = vmatpush3.bf16.msra.mxu1 %v623_v10  ;;  %v488_v12 = vld [vmem:[%s944_s2] ss:$0 sm:$0xff]  ;;  %v625_v24 = vld [vmem:[#allocation7 + $0x10] sm:$0xff]   ;;  %v627_v26 = vld [vmem:[#allocation7 + $0x20] sm:$0xff]   ;;  %p740_p4 = scmp.ne.s32.totalorder %s478_s22, %s739_s23  ;;  %p745_p6 = scmp.lt.s32.totalorder %s739_s23, %s739_s23 }
  0x4e   :  { %568 = vmatprep.subr.bf16.mxu1 %v775_v0  ;;  %v626_v25 = vld [vmem:[#allocation7 + $0x18] sm:$0xff]   ;;  %v628_v27 = vld [vmem:[#allocation7 + $0x28] sm:$0xff]   ;;  %v629_v28 = vld [vmem:[#allocation7 + $0x30] sm:$0xff]  }
  0x4f   :  { %v630_v29 = vld [vmem:[#allocation7 + $0x38] sm:$0xff]   ;;  %v631_v39 = vld [vmem:[#allocation8] sm:$0xff]   ;;  %v632_v40 = vld [vmem:[#allocation8 + $0x8] sm:$0xff]   ;;  %p746_p7 = por %p745_p6, %p744_p5 }
  0x50   :  { %549 = vmatpush3.bf16.msra.mxu0 %v616_v2  ;;  %v498_v35 = vld [vmem:[%s945_s3] ss:$0 sm:$0xff]  ;;  %v633_v53 = vld [vmem:[#allocation8 + $0x10] sm:$0xff]   ;;  %v635_v55 = vld [vmem:[#allocation8 + $0x20] sm:$0xff]  }
  0x51   :  { %550 = vmatprep.subr.bf16.mxu0 %v775_v0  ;;  %569 = vmatpush3.bf16.msra.mxu1 %v624_v11  ;;  %v499_v41 = vld [vmem:[%s947_s5] ss:$0 sm:$0xff]  ;;  %v636_v56 = vld [vmem:[#allocation8 + $0x28] sm:$0xff]   ;;  %v637_v57 = vld [vmem:[#allocation8 + $0x30] sm:$0xff]   ;;  %p747_p8 = pnand %p746_p7, %p740_p4 }
  0x52   :  { %570 = vmatprep.subr.bf16.mxu1 %v775_v0  ;;  %v634_v54 = vld [vmem:[#allocation8 + $0x18] sm:$0xff]  }
  0x53   :  { %v638_v58 = vld [vmem:[#allocation8 + $0x38] sm:$0xff]  }
  0x54   :  { %551 = vmatpush3.bf16.msra.mxu0 %v617_v3  ;;  %v509_v1 = vld [vmem:[%s948_s6] ss:$0 sm:$0xff] }
  0x55   :  { %552 = vmatprep.subr.bf16.mxu0 %v775_v0  ;;  %571 = vmatpush3.bf16.msra.mxu1 %v625_v24 }
  0x56   :  { %572 = vmatprep.subr.bf16.mxu1 %v775_v0 }
  0x58   :  { %553 = vmatpush3.bf16.msra.mxu0 %v618_v4 }
  0x59   :  { %554 = vmatprep.subr.bf16.mxu0 %v775_v0  ;;  %573 = vmatpush3.bf16.msra.mxu1 %v626_v25 }
  0x5a   :  { %574 = vmatprep.subr.bf16.mxu1 %v775_v0 }
  0x5c   :  { %555 = vmatpush3.bf16.msra.mxu0 %v619_v5  ;;  %v510_v5 = vld [vmem:[%s950_s8] ss:$0 sm:$0xff] }
  0x5d   :  { %556 = vmatprep.subr.bf16.mxu0 %v775_v0  ;;  %575 = vmatpush3.bf16.msra.mxu1 %v627_v26 }
  0x5e   :  { %576 = vmatprep.subr.bf16.mxu1 %v775_v0 }
  0x60   :  { %557 = vmatpush3.bf16.msra.mxu0 %v620_v6 }
  0x61   :  { %558 = vmatprep.subr.bf16.mxu0 %v775_v0  ;;  %577 = vmatpush3.bf16.msra.mxu1 %v628_v27 }
  0x62   :  { %578 = vmatprep.subr.bf16.mxu1 %v775_v0 }
  0x64   :  { %559 = vmatpush3.bf16.msra.mxu0 %v621_v7 }
  0x65   :  { %560 = vmatprep.subr.bf16.mxu0 %v775_v0  ;;  %579 = vmatpush3.bf16.msra.mxu1 %v629_v28 }
  0x66   :  { %580 = vmatprep.subr.bf16.mxu1 %v775_v0 }
  0x68   :  { %561 = vmatpush3.bf16.msra.mxu0 %v622_v8 }
  0x69   :  { %586 = vmatprep.subr.bf16.mxu0 %v775_v0  ;;  %581 = vmatpush3.bf16.msra.mxu1 %v630_v29 }
  0x6b   :  { %563 = vmatmul.mubr.bf16.vlgmr.msra.gmra.mrb[0].mxu0 %v87_v9 }
  0x6c   :  { %602 = vmatprep.mubr.msk.bf16.mxu0 %vm776_vm0, %v775_v0  ;;  %587 = vmatpush3.bf16.msra.mxu0 %v631_v39 }
  0x6d   :  { %588 = vmatprep.subr.bf16.mxu0 %v775_v0 }
  0x70   :  { %589 = vmatpush3.bf16.msra.mxu0 %v632_v40 }
  0x71   :  { %590 = vmatprep.subr.bf16.mxu0 %v775_v0 }
  0x74   :  { %591 = vmatpush3.bf16.msra.mxu0 %v633_v53 }
  0x75   :  { %592 = vmatprep.subr.bf16.mxu0 %v775_v0 }
  0x78   :  { %593 = vmatpush3.bf16.msra.mxu0 %v634_v54 }
  0x79   :  { %594 = vmatprep.subr.bf16.mxu0 %v775_v0 }
  0x7c   :  { %595 = vmatpush3.bf16.msra.mxu0 %v635_v55 }
  0x7d   :  { %596 = vmatprep.subr.bf16.mxu0 %v775_v0 }
  0x80   :  { %597 = vmatpush3.bf16.msra.mxu0 %v636_v56 }
  0x81   :  { %598 = vmatprep.subr.bf16.mxu0 %v775_v0 }
  0x84   :  { %599 = vmatpush3.bf16.msra.mxu0 %v637_v57 }
  0x85   :  { %600 = vmatprep.subr.bf16.mxu0 %v775_v0 }
  0x88   :  { %601 = vmatpush3.bf16.msra.mxu0 %v638_v58 }
 0x13e   :  { %v193_v13 = vpop.f32.mrb[0].mxu0 }
 0x13f   :  { %v194_v14 = vadd.f32 %v488_v12, %v193_v13  ;;  %v564_v15 = vpop.f32.mrb[1].mxu0 }
 0x140   :  { %v196_v16 = vpop.f32.mrb[2].mxu0 }
 0x141   :  { %v497_v17 = vmul.f32 -1.442695, %v194_v14  ;;  %v565_v18 = vpop.f32.mrb[3].mxu0 }
 0x143   :  { %639 = vpow2.f32 %v497_v17 }
 0x14d   :  { %v640_v19 = vpop.eup %639 }
 0x14e   :  { %v203_v20 = vadd.f32 1.0, %v640_v19 }
 0x150   :  { %641 = vrcp.f32 %v203_v20 }
 0x15a   :  { %v642_v21 = vpop.eup %641 }
 0x15b   :  { %v206_v22 = vmul.f32 %v642_v21, %v194_v14 }
 0x15d   :  { %v207_v23 = vmul.f32 %v206_v22, %v206_v22 }
 0x15f   :  { %208 = vadd.xlane.f32.xlu0 %v207_v23 }
 0x1ec   :  { %v209_v30 = vpop.xlane.xlu0 %208 }
 0x1ed   :  { %v211_v31 = vmul.f32 0.0078125, %v209_v30 }
 0x1ef   :  { %v212_v32 = vmul.f32 2.0, %v211_v31 }
 0x1f1   :  { %v213_v33 = vadd.f32 1e-06, %v212_v32 }
 0x1f3   :  { %643 = vrsqrt.f32 %v213_v33 }
 0x1fd   :  { %v644_v34 = vpop.eup %643 }
 0x1fe   :  { %v215_v36 = vmul.f32 %v644_v34, %v206_v22 }
 0x200   :  { %v222_v37 = vmul.f32 %v498_v35, %v215_v36 }
 0x202   :  { %v223_v38 = vpack.c.bf16 %v222_v37, %v222_v37 }
 0x204   :  { %583 = vmatmul.mubr.bf16.vlgmr.msra.gmra.mrb[0].mxu1 %v223_v38 }
 0x2d7   :  { %v329_v42 = vpop.f32.mrb[0].mxu1 }
 0x2d8   :  { %v330_v43 = vadd.f32 %v499_v41, %v329_v42  ;;  %v584_v44 = vpop.f32.mrb[1].mxu1 }
 0x2d9   :  { %v332_v45 = vpop.f32.mrb[2].mxu1 }
 0x2da   :  { %v508_v46 = vmul.f32 -1.442695, %v330_v43  ;;  %v585_v47 = vpop.f32.mrb[3].mxu1 }
 0x2dc   :  { %645 = vpow2.f32 %v508_v46 }
 0x2e6   :  { %v646_v48 = vpop.eup %645 }
 0x2e7   :  { %v339_v49 = vadd.f32 1.0, %v646_v48 }
 0x2e9   :  { %647 = vrcp.f32 %v339_v49 }
 0x2f3   :  { %v648_v50 = vpop.eup %647 }
 0x2f4   :  { %v342_v51 = vmul.f32 %v648_v50, %v330_v43 }
 0x2f6   :  { %v343_v52 = vmul.f32 %v342_v51, %v342_v51 }
 0x2f8   :  { %344 = vadd.xlane.f32.xlu0 %v343_v52 }
 0x385   :  { %v345_v59 = vpop.xlane.xlu0 %344 }
 0x386   :  { %v346_v60 = vmul.f32 0.0078125, %v345_v59 }
 0x388   :  { %v347_v61 = vmul.f32 2.0, %v346_v60 }
 0x38a   :  { %v348_v62 = vadd.f32 1e-06, %v347_v61 }
 0x38c   :  { %649 = vrsqrt.f32 %v348_v62 }
 0x396   :  { %v650_v63 = vpop.eup %649 }
 0x397   :  { %v350_v2 = vmul.f32 %v650_v63, %v342_v51 }
 0x399   :  { %v357_v3 = vmul.f32 %v509_v1, %v350_v2 }
 0x39b   :  { %v358_v4 = vpack.c.bf16 %v357_v3, %v357_v3 }
 0x39d   :  { %603 = vmatmul.mubr.bf16.vlgmr.msra.gmra.mrb[4].mxu0 %v358_v4 }
 0x470   :  { %v464_v0 = vpop.f32.mrb[4].mxu0 }
 0x471   :  { %v465_v6 = vadd.f32 %v510_v5, %v464_v0  ;;  %v604_v7 = vpop.f32.mrb[5].mxu0 }
 0x472   :  { %v467_v8 = vpop.f32.mrb[6].mxu0 }
 0x473   :  { %470 = vst [vmem:[#allocation10] sm:$0xff] %v465_v6  ;;  %v605_v9 = vpop.f32.mrb[7].mxu0 }
 0x474   :  { %750 = shalt.err (!%p747_p8)
}
 0x475   :  { %s751_s8 = scalar_lea.hbm %s951_s9, 128 }
 0x476   :  { %p752_p9 = scmp.ne.s32.totalorder %s951_s9, %s751_s8  ;;  %p755_p10 = scmp.lt.u32.totalorder %s751_s8, %s951_s9 }
 0x478   :  { %p757_p11 = pnand %p755_p10, %p752_p9 }
 0x47a   :  { %760 = shalt.err (!%p757_p11)
}
 0x47b   :  { %480 = dma.vmem_to_hbm [thread:$0]  %s478_s22, 128, %s951_s9, [#allocation4]  }
 0x47c   :  { %767 = dma.done.wait [#allocation4], 128  }
 0x47d   :  { %768 = vsyncadd [#allocation4], 4294967168 }
 0x47e   :  { %484 = vsyncpa [#allocation3], 1 }
 0x47f   :  { %485 = vsyncpa [#allocation6], 1 }
 0x480   :  { %486 = vsyncpa [#allocation9], 1 }
 0x481   :  { %487 = vsyncpa [#allocation4], 1 }

</bundles_post_ra>
